<compile_context>
chip_gen: v5e
topology: v5e:2x2
jax: 0.10.0
libtpu: 0.0.40
codegen_flags: <defaults>
</compile_context>

<pallas_src>
import functools

import jax
import jax.numpy as jnp
from jax import lax
from jax.experimental import pallas as pl
from jax.experimental.pallas import tpu as pltpu


def _round_up(x, m):
    return ((x + m - 1) // m) * m


def _use_bf16_exp():
    # bf16 EUP exists on v6e / v7x; keep f32 exp on older generations (v5e etc.).
    try:
        kind = jax.devices()[0].device_kind.lower()
    except Exception:
        return False
    return not any(tag in kind for tag in ("v2", "v3", "v4", "v5"))


def _choose_tiles(m):
    """Returns (row_tile, col_tile, m_padded)."""
    if m <= 512:
        t = max(_round_up(m, 8), 8)
        return t, t, t
    m_pad = _round_up(m, 256)
    tr = 256
    tc = 512 if m_pad % 512 == 0 else 256
    return tr, tc, m_pad


def _lse_kernel(fr_ref, fc_ref, lse_ref, m_sc, l_sc, *,
                inv_temp, tr, tc, m_valid, m_padded, bf16_exp):
    """One (anchor-row-block i, contrast-col-block k) step: online logsumexp
    of the scaled similarity logits over non-diagonal, non-padded columns.

    fr_ref : [tr, Dp] bf16   anchor feature rows
    fc_ref : [tc, Dp] bf16   contrast feature rows (columns of the sim matrix)
    lse_ref: [tr, 1]  f32    per-row logsumexp (written on the last col block)
    m_sc / l_sc : [tr, 1] f32 running max / running exp-sum
    """
    i = pl.program_id(0)
    k = pl.program_id(1)
    nk = pl.num_programs(1)

    @pl.when(k == 0)
    def _init():
        m_sc[...] = jnp.full((tr, 1), -jnp.inf, jnp.float32)
        l_sc[...] = jnp.zeros((tr, 1), jnp.float32)

    dn = (((1,), (1,)), ((), ()))  # contract last dims (NT matmul, no transpose)

    # contrastive logits tile: bf16 MXU matmul, f32 accumulation
    adc = lax.dot_general(fr_ref[...], fc_ref[...], dn,
                          preferred_element_type=jnp.float32) * inv_temp  # [tr, tc]

    # online softmax update (max over the FULL row incl. diagonal; cancels exactly)
    m_prev = m_sc[...]
    m_new = jnp.maximum(m_prev, jnp.max(adc, axis=1, keepdims=True))
    alpha = jnp.exp(m_prev - m_new)
    shifted = adc - m_new
    if bf16_exp:
        p = jnp.exp(shifted.astype(jnp.bfloat16))   # bf16 EUP path (v6e/v7x)
    else:
        p = jnp.exp(shifted)
    m_sc[...] = m_new

    # Only tiles touching the diagonal (or the padded tail) pay for the iota
    # compares and the tile-wide select.
    has_pad = m_valid != m_padded  # static Python bool
    row_lo = i * tr
    col_lo = k * tc
    is_diag = jnp.logical_and(row_lo < col_lo + tc, col_lo < row_lo + tr)
    if has_pad:
        needs_edit = jnp.logical_or(is_diag, k == nk - 1)
    else:
        needs_edit = is_diag

    @pl.when(needs_edit)
    def _masked_tile():
        row_g = lax.broadcasted_iota(jnp.int32, (tr, tc), 0) + row_lo
        col_g = lax.broadcasted_iota(jnp.int32, (tr, tc), 1) + col_lo
        keep = row_g != col_g                              # exclude self-similarity
        if has_pad:
            keep = jnp.logical_and(keep, col_g < m_valid)  # exclude padded columns
        p_kept = jnp.where(keep, p, jnp.zeros_like(p)).astype(jnp.float32)
        l_sc[...] = alpha * l_sc[...] + jnp.sum(p_kept, axis=1, keepdims=True)

    @pl.when(jnp.logical_not(needs_edit))
    def _plain_tile():
        l_sc[...] = alpha * l_sc[...] + jnp.sum(p.astype(jnp.float32),
                                                axis=1, keepdims=True)

    @pl.when(k == nk - 1)
    def _finalize():
        lse_ref[...] = m_sc[...] + jnp.log(l_sc[...])


def gen_sup_con_loss_v2(features, labels, anc_mask=None,
                        temperature=0.07, base_temperature=0.07):
    """features = (anchor_feats, contrast_feats), each [N, D]
       labels   = (anchor_labels, contrast_labels), each [N, C]
       anc_mask = optional (anchor_select, contrast_select), each [N] bool."""
    feats = jnp.concatenate(features, axis=0).astype(jnp.float32)   # [M, D]
    labs = jnp.concatenate(labels, axis=0).astype(jnp.float32)      # [M, C]
    M, D = feats.shape
    inv_temp = 1.0 / float(temperature)
    loss_scale = float(temperature) / float(base_temperature)

    # ---- positive-mask statistics: small O(M*C*D) f32 precompute -----------
    lnorm = jnp.sqrt(jnp.sum(labs * labs, axis=-1, keepdims=True))
    labs_hat = labs / jnp.maximum(lnorm, 1e-12)                     # eps guard
    diag_mask = jnp.sum(labs_hat * labs_hat, axis=-1)               # mask_ii
    sm = labs_hat @ jnp.sum(labs_hat, axis=0) - diag_mask           # sum_{k!=i} mask_ik
    gram = labs_hat.T @ feats                                       # [C, D]
    smadc_full = jnp.sum((labs_hat @ gram) * feats, axis=-1) * inv_temp
    diag_adc = jnp.sum(feats * feats, axis=-1) * inv_temp
    smadc = smadc_full - diag_mask * diag_adc                       # sum_{k!=i} mask_ik*adc_ik

    # ---- flash logsumexp over the M x M similarity matrix (Pallas) ---------
    tr, tc, m_pad = _choose_tiles(M)
    d_pad = _round_up(D, 128)
    # Zero padding of D is exact; padded columns/rows are masked / dropped.
    feats_p = jnp.pad(feats, ((0, m_pad - M), (0, d_pad - D))).astype(jnp.bfloat16)

    ni, nk = m_pad // tr, m_pad // tc
    kernel = functools.partial(
        _lse_kernel, inv_temp=inv_temp, tr=tr, tc=tc,
        m_valid=M, m_padded=m_pad, bf16_exp=_use_bf16_exp())

    grid_spec = pltpu.PrefetchScalarGridSpec(
        num_scalar_prefetch=0,
        grid=(ni, nk),
        in_specs=[
            pl.BlockSpec((tr, d_pad), lambda i, k: (i, 0)),  # anchor feature rows
            pl.BlockSpec((tc, d_pad), lambda i, k: (k, 0)),  # contrast feature cols
        ],
        out_specs=pl.BlockSpec((tr, 1), lambda i, k: (i, 0)),
        scratch_shapes=[
            pltpu.VMEM((tr, 1), jnp.float32),   # running max
            pltpu.VMEM((tr, 1), jnp.float32),   # running exp-sum (diag excluded)
        ],
    )

    feat_bytes = feats_p.size * feats_p.dtype.itemsize
    cost = pl.CostEstimate(
        flops=2 * m_pad * m_pad * d_pad,
        transcendentals=m_pad * m_pad,
        # anchor rows streamed once total, contrast cols re-streamed per row block
        bytes_accessed=feat_bytes * (1 + ni) + m_pad * 4,
    )

    lse = pl.pallas_call(
        kernel,
        out_shape=jax.ShapeDtypeStruct((m_pad, 1), jnp.float32),
        grid_spec=grid_spec,
        compiler_params=pltpu.CompilerParams(
            dimension_semantics=("parallel", "arbitrary")),
        cost_estimate=cost,
    )(feats_p, feats_p)[:M, 0]

    # ---- finalize per-row loss and reduce (tiny wrapper glue) ---------------
    # sum(mask * log_prob) = sum(mask*adc) - logsumexp * sum(mask)
    mean_log_prob_pos = (smadc - lse * sm) / (sm + 1e-8)
    loss_rows = -loss_scale * mean_log_prob_pos
    if anc_mask is not None:
        # torch `loss[select].mean()` == weighted mean over the boolean select.
        select = jnp.concatenate(anc_mask, axis=0).astype(jnp.float32)
        return jnp.sum(loss_rows * select) / jnp.sum(select)
    return jnp.mean(loss_rows)


def _reference(features, labels, temperature=0.07, base_temperature=0.07):
    """Pure-JAX f32 reference mirroring the PyTorch forward (anc_mask=None)."""
    l = jnp.concatenate(labels, axis=0).astype(jnp.float32)
    f = jnp.concatenate(features, axis=0).astype(jnp.float32)
    m = f.shape[0]
    lnorm = jnp.linalg.norm(l, axis=-1, keepdims=True)
    deno = lnorm @ lnorm.T
    mask = (l @ l.T) / deno
    logits_mask = 1.0 - jnp.eye(m, dtype=jnp.float32)
    mask = mask * logits_mask
    adc = (f @ f.T) / temperature
    logits = adc - jnp.max(adc, axis=1, keepdims=True)
    exp_logits = jnp.exp(logits) * logits_mask
    log_prob = logits - jnp.log(jnp.sum(exp_logits, axis=1, keepdims=True))
    mean_log_prob_pos = jnp.sum(mask * log_prob, axis=1) / (jnp.sum(mask, axis=1) + 1e-8)
    loss = -(temperature / base_temperature) * mean_log_prob_pos
    return jnp.mean(loss)


if __name__ == "__main__":
    key = jax.random.PRNGKey(0)
    k1, k2, k3, k4 = jax.random.split(key, 4)

    N, D, C = 8, 32, 10  # batch per view, feat_dim, num classes

    anchor_feats = jax.random.normal(k1, (N, D), dtype=jnp.float32)
    anchor_feats = anchor_feats / jnp.linalg.norm(anchor_feats, axis=-1, keepdims=True)
    contrast_feats = jax.random.normal(k2, (N, D), dtype=jnp.float32)
    contrast_feats = contrast_feats / jnp.linalg.norm(contrast_feats, axis=-1, keepdims=True)

    anchor_labels = jax.nn.one_hot(jax.random.randint(k3, (N,), 0, C), C, dtype=jnp.float32)
    contrast_labels = jax.nn.one_hot(jax.random.randint(k4, (N,), 0, C), C, dtype=jnp.float32)

    # bf16 features on the MXU (+ bf16 exp on v6e/v7x) -> compare at 2e-2.
    loss = gen_sup_con_loss_v2(
        (anchor_feats, contrast_feats), (anchor_labels, contrast_labels))
    loss = jax.block_until_ready(loss)
    ref = _reference((anchor_feats, contrast_feats), (anchor_labels, contrast_labels))
    assert jnp.allclose(loss, ref, rtol=2e-2, atol=2e-2), (loss, ref)

    # Exercise the padded path (M = 10, not a multiple of 8).
    N2 = 5
    loss2 = gen_sup_con_loss_v2(
        (anchor_feats[:N2], contrast_feats[:N2]),
        (anchor_labels[:N2], contrast_labels[:N2]))
    loss2 = jax.block_until_ready(loss2)
    ref2 = _reference(
        (anchor_feats[:N2], contrast_feats[:N2]),
        (anchor_labels[:N2], contrast_labels[:N2]))
    assert jnp.allclose(loss2, ref2, rtol=2e-2, atol=2e-2), (loss2, ref2)

    # TODO(synk): optionally bump fc_ref to pipeline_mode=pl.Buffered(3) if a
    # profile at production D shows exposed column-block DMA.
    print("KERNEL_OK")
</pallas_src>

<mosaic_0001>
module attributes {stable_mosaic.version = 11 : i64} {
  func.func @_lse_kernel(%arg0: i32, %arg1: i32, %arg2: memref<16x128xbf16, #tpu.memory_space<vmem>>, %arg3: memref<16x128xbf16, #tpu.memory_space<vmem>>, %arg4: memref<16x1xf32, #tpu.memory_space<vmem>>, %arg5: memref<16x1xf32, #tpu.memory_space<vmem>>, %arg6: memref<16x1xf32, #tpu.memory_space<vmem>>) attributes {dimension_semantics = [#tpu.dimension_semantics<parallel>, #tpu.dimension_semantics<arbitrary>], iteration_bounds = array<i64: 1, 1>, scalar_prefetch = 0 : i64, scratch_operands = 2 : i64, tpu.core_type = #tpu.core_type<tc>, window_params = [{transform_indices = @transform_0, window_bounds = array<i64: 16, 128>}, {transform_indices = @transform_1, window_bounds = array<i64: 16, 128>}, {transform_indices = @transform_2, window_bounds = array<i64: 16, 1>}]} {
    %c0_i32 = arith.constant 0 : i32
    %0 = arith.cmpi eq, %arg1, %c0_i32 : i32
    %1 = arith.extui %0 : i1 to i32
    %c0_i32_0 = arith.constant 0 : i32
    %2 = arith.cmpi ne, %1, %c0_i32_0 : i32
    scf.if %2 {
      %cst_17 = arith.constant 0xFF800000 : f32
      %34 = vector.broadcast %cst_17 : f32 to vector<16x1xf32>
      %c0_18 = arith.constant 0 : index
      %c0_19 = arith.constant 0 : index
      %35 = vector.load %arg5[%c0_18, %c0_19] : memref<16x1xf32, #tpu.memory_space<vmem>>, vector<16x1xf32>
      tpu.vector_store %arg5[%c0_18, %c0_19], %34 {strides = array<i32>} : memref<16x1xf32, #tpu.memory_space<vmem>>, vector<16x1xf32>,
      %cst_20 = arith.constant 0.000000e+00 : f32
      %36 = vector.broadcast %cst_20 : f32 to vector<16x1xf32>
      %c0_21 = arith.constant 0 : index
      %c0_22 = arith.constant 0 : index
      %37 = vector.load %arg6[%c0_21, %c0_22] : memref<16x1xf32, #tpu.memory_space<vmem>>, vector<16x1xf32>
      tpu.vector_store %arg6[%c0_21, %c0_22], %36 {strides = array<i32>} : memref<16x1xf32, #tpu.memory_space<vmem>>, vector<16x1xf32>,
    } else {
    }
    %c0 = arith.constant 0 : index
    %c0_1 = arith.constant 0 : index
    %3 = vector.load %arg2[%c0, %c0_1] : memref<16x128xbf16, #tpu.memory_space<vmem>>, vector<16x128xbf16>
    %c0_2 = arith.constant 0 : index
    %c0_3 = arith.constant 0 : index
    %4 = vector.load %arg3[%c0_2, %c0_3] : memref<16x128xbf16, #tpu.memory_space<vmem>>, vector<16x128xbf16>
    %cst = arith.constant dense<0.000000e+00> : vector<16x16xf32>
    %5 = tpu.matmul %3, %4, %cst {dimension_numbers = #tpu.dot_dimension_numbers<[1], [1], [0], [0], [0, 0, 1, 0], [], []>} : vector<16x128xbf16>, vector<16x128xbf16>, vector<16x16xf32> -> vector<16x16xf32>
    %cst_4 = arith.constant 14.2857141 : f32
    %6 = vector.broadcast %cst_4 : f32 to vector<16x16xf32>
    %7 = arith.mulf %5, %6 : vector<16x16xf32>
    %c0_5 = arith.constant 0 : index
    %c0_6 = arith.constant 0 : index
    %8 = vector.load %arg5[%c0_5, %c0_6] : memref<16x1xf32, #tpu.memory_space<vmem>>, vector<16x1xf32>
    %cst_7 = arith.constant dense<0xFF800000> : vector<16xf32>
    %9 = vector.multi_reduction <maximumf>, %7, %cst_7 [1] : vector<16x16xf32> to vector<16xf32>
    %10 = vector.shape_cast %9 : vector<16xf32> to vector<16x1xf32>
    %11 = arith.maximumf %8, %10 : vector<16x1xf32>
    %12 = arith.subf %8, %11 : vector<16x1xf32>
    %13 = math.exp %12 : vector<16x1xf32>
    %14 = vector.broadcast %11 : vector<16x1xf32> to vector<16x16xf32>
    %15 = arith.subf %7, %14 : vector<16x16xf32>
    %16 = arith.truncf %15 : vector<16x16xf32> to vector<16x16xbf16>
    %17 = math.exp %16 : vector<16x16xbf16>
    %c0_8 = arith.constant 0 : index
    %c0_9 = arith.constant 0 : index
    %18 = vector.load %arg5[%c0_8, %c0_9] : memref<16x1xf32, #tpu.memory_space<vmem>>, vector<16x1xf32>
    tpu.vector_store %arg5[%c0_8, %c0_9], %11 {strides = array<i32>} : memref<16x1xf32, #tpu.memory_space<vmem>>, vector<16x1xf32>,
    %c16_i32 = arith.constant 16 : i32
    %19 = arith.muli %arg0, %c16_i32 : i32
    %c16_i32_10 = arith.constant 16 : i32
    %20 = arith.muli %arg1, %c16_i32_10 : i32
    %c16_i32_11 = arith.constant 16 : i32
    %21 = arith.addi %20, %c16_i32_11 : i32
    %22 = arith.cmpi slt, %19, %21 : i32
    %c16_i32_12 = arith.constant 16 : i32
    %23 = arith.addi %19, %c16_i32_12 : i32
    %24 = arith.cmpi slt, %20, %23 : i32
    %25 = arith.andi %22, %24 : i1
    %26 = arith.extui %25 : i1 to i32
    %c0_i32_13 = arith.constant 0 : i32
    %27 = arith.cmpi ne, %26, %c0_i32_13 : i32
    scf.if %27 {
      %34 = tpu.iota {dimensions = array<i32: 0>} : vector<16x16xi32>
      %35 = vector.broadcast %19 : i32 to vector<16x16xi32>
      %36 = arith.addi %34, %35 : vector<16x16xi32>
      %37 = tpu.iota {dimensions = array<i32: 1>} : vector<16x16xi32>
      %38 = vector.broadcast %20 : i32 to vector<16x16xi32>
      %39 = arith.addi %37, %38 : vector<16x16xi32>
      %40 = arith.cmpi ne, %36, %39 : vector<16x16xi32>
      %cst_17 = arith.constant 0.000000e+00 : bf16
      %41 = vector.broadcast %cst_17 : bf16 to vector<16x16xbf16>
      %42 = arith.select %40, %17, %41 : vector<16x16xi1>, vector<16x16xbf16>
      %43 = arith.extf %42 : vector<16x16xbf16> to vector<16x16xf32>
      %c0_18 = arith.constant 0 : index
      %c0_19 = arith.constant 0 : index
      %44 = vector.load %arg6[%c0_18, %c0_19] : memref<16x1xf32, #tpu.memory_space<vmem>>, vector<16x1xf32>
      %45 = arith.mulf %13, %44 : vector<16x1xf32>
      %cst_20 = arith.constant dense<0.000000e+00> : vector<16xf32>
      %46 = vector.multi_reduction <add>, %43, %cst_20 [1] : vector<16x16xf32> to vector<16xf32>
      %47 = vector.shape_cast %46 : vector<16xf32> to vector<16x1xf32>
      %48 = arith.addf %45, %47 : vector<16x1xf32>
      %c0_21 = arith.constant 0 : index
      %c0_22 = arith.constant 0 : index
      %49 = vector.load %arg6[%c0_21, %c0_22] : memref<16x1xf32, #tpu.memory_space<vmem>>, vector<16x1xf32>
      tpu.vector_store %arg6[%c0_21, %c0_22], %48 {strides = array<i32>} : memref<16x1xf32, #tpu.memory_space<vmem>>, vector<16x1xf32>,
    } else {
    }
    %true = arith.constant true
    %28 = arith.xori %25, %true : i1
    %29 = arith.extui %28 : i1 to i32
    %c0_i32_14 = arith.constant 0 : i32
    %30 = arith.cmpi ne, %29, %c0_i32_14 : i32
    scf.if %30 {
      %c0_17 = arith.constant 0 : index
      %c0_18 = arith.constant 0 : index
      %34 = vector.load %arg6[%c0_17, %c0_18] : memref<16x1xf32, #tpu.memory_space<vmem>>, vector<16x1xf32>
      %35 = arith.mulf %13, %34 : vector<16x1xf32>
      %36 = arith.extf %17 : vector<16x16xbf16> to vector<16x16xf32>
      %cst_19 = arith.constant dense<0.000000e+00> : vector<16xf32>
      %37 = vector.multi_reduction <add>, %36, %cst_19 [1] : vector<16x16xf32> to vector<16xf32>
      %38 = vector.shape_cast %37 : vector<16xf32> to vector<16x1xf32>
      %39 = arith.addf %35, %38 : vector<16x1xf32>
      %c0_20 = arith.constant 0 : index
      %c0_21 = arith.constant 0 : index
      %40 = vector.load %arg6[%c0_20, %c0_21] : memref<16x1xf32, #tpu.memory_space<vmem>>, vector<16x1xf32>
      tpu.vector_store %arg6[%c0_20, %c0_21], %39 {strides = array<i32>} : memref<16x1xf32, #tpu.memory_space<vmem>>, vector<16x1xf32>,
    } else {
    }
    %c0_i32_15 = arith.constant 0 : i32
    %31 = arith.cmpi eq, %arg1, %c0_i32_15 : i32
    %32 = arith.extui %31 : i1 to i32
    %c0_i32_16 = arith.constant 0 : i32
    %33 = arith.cmpi ne, %32, %c0_i32_16 : i32
    scf.if %33 {
      %c0_17 = arith.constant 0 : index
      %c0_18 = arith.constant 0 : index
      %34 = vector.load %arg5[%c0_17, %c0_18] : memref<16x1xf32, #tpu.memory_space<vmem>>, vector<16x1xf32>
      %c0_19 = arith.constant 0 : index
      %c0_20 = arith.constant 0 : index
      %35 = vector.load %arg6[%c0_19, %c0_20] : memref<16x1xf32, #tpu.memory_space<vmem>>, vector<16x1xf32>
      %36 = math.log %35 : vector<16x1xf32>
      %37 = arith.addf %34, %36 : vector<16x1xf32>
      %c0_21 = arith.constant 0 : index
      %c0_22 = arith.constant 0 : index
      %38 = vector.load %arg4[%c0_21, %c0_22] : memref<16x1xf32, #tpu.memory_space<vmem>>, vector<16x1xf32>
      tpu.vector_store %arg4[%c0_21, %c0_22], %37 {strides = array<i32>} : memref<16x1xf32, #tpu.memory_space<vmem>>, vector<16x1xf32>,
    } else {
    }
    return
  }
  func.func @transform_0(%arg0: i32, %arg1: i32) -> (i32, i32) {
    %c0_i32 = arith.constant 0 : i32
    %c0_i32_0 = arith.constant 0 : i32
    return %arg0, %c0_i32 : i32, i32
  }
  func.func @transform_1(%arg0: i32, %arg1: i32) -> (i32, i32) {
    %c0_i32 = arith.constant 0 : i32
    %c0_i32_0 = arith.constant 0 : i32
    return %arg1, %c0_i32 : i32, i32
  }
  func.func @transform_2(%arg0: i32, %arg1: i32) -> (i32, i32) {
    %c0_i32 = arith.constant 0 : i32
    %c0_i32_0 = arith.constant 0 : i32
    return %arg0, %c0_i32 : i32, i32
  }
}

</mosaic_0001>

<bundles_post_ra>
// kernel: tpu_custom_call.1
= control target key start
LH: loop header
LB: loop body
LE: loop exit
PB: predicated region body
PF: predicated region fallthrough
CT: control target
= control target key end

     0   :  { %7 = vsyncpa [#allocation5], 0  ;;  %s340_s0 = inlined_call_operand.hbm [shape: bf16[16,128], index: 0, kind: input, shape index: {}]   ;;  %s341_s1 = inlined_call_operand.hbm [shape: bf16[16,128], index: 1, kind: input, shape index: {}]   ;;  %s342_s2 = inlined_call_operand.vmem [shape: f32[16,1], index: 2, kind: output, shape index: {}]  }
   0x1   :  { %s13_s11 = sshll.u32 %s340_s0, 4  ;;  %s14_s11 = int_to_ptr.hbm [resolvable:$true] %s13_s11 }
   0x2   :  { %8 = vsyncpa [#allocation7], 0  ;;  %s292_s12 = smov [#allocation4]   ;;  %s26_s16 = sshll.u32 %s341_s1, 4  ;;  %s27_s16 = int_to_ptr.hbm [resolvable:$true] %s26_s16 }
   0x3   :  { %s15_s13 = sshll.u32 %s292_s12, 4  ;;  %s293_s17 = smov 64   ;;  %s16_s13 = int_to_ptr.vmem [resolvable:$true] %s15_s13 }
   0x4   :  { %s294_s18 = smov 4   ;;  %s295_s19 = smov [#allocation6]  }
   0x5   :  { %21 = dma.hbm_to_vmem [thread:$0]  %s14_s11, 128, %s16_s13, [#allocation5], %s293_s17, %s293_s17, %s294_s18  }
   0x6   :  { %s28_s20 = sshll.u32 %s295_s19, 4  ;;  %s29_s20 = int_to_ptr.vmem [resolvable:$true] %s28_s20 }
   0x7   :  { %34 = dma.hbm_to_vmem [thread:$0]  %s27_s16, 128, %s29_s20, [#allocation7], %s293_s17, %s293_s17, %s294_s18  }
   0x8   :  { %288 = dma.done.wait [#allocation5], 128  }
   0x9   :  { %289 = vsyncadd [#allocation5], 4294967168 }
   0xa   :  { %290 = dma.done.wait [#allocation7], 128  }
   0xb   :  { %291 = vsyncadd [#allocation7], 4294967168  ;;  %v218_v0 = vld [vmem:[#allocation6] sm:$0xff]  ;;  %v217_v1 = vld [vmem:[#allocation4] sm:$0xff]  ;;  %vm48_vm0 = vcmask 7168   ;;  %v296_v2 = vmov -inf   ;;  %v137_v22 = vlaneseq }
   0xc   :  { %76 = vmatpush.bf16.xpose.msra.mxu0 %v218_v0  ;;  %49 = vst.msk [vmem:[#allocation2] sm:$0xff] %vm48_vm0, %v296_v2  ;;  %vm87_vm1 = vcmask 130048   ;;  %v297_v9 = vmov 0   ;;  %v298_v10 = vmov 0.0  }
   0xd   :  { %50 = vst.msk [vmem:[#allocation2 + $0x8] sm:$0xff] %vm48_vm0, %v296_v2  ;;  %226 = vset.pattern.permute.xlu1 %v297_v9  ;;  %227 = vset.pattern.permute.xlu0 %v297_v9  ;;  %v138_v26 = vshrl.u32 %v137_v22, 7  ;;  %v144_v27 = vand.u32 127, %v137_v22 }
   0xe   :  { %51 = vst.msk [vmem:[#allocation3] sm:$0xff] %vm48_vm0, %v298_v10 }
   0xf   :  { %52 = vst.msk [vmem:[#allocation3 + $0x8] sm:$0xff] %vm48_vm0, %v298_v10  ;;  %vm147_vm2 = vcmp.ne.s32.totalorder %v138_v26, %v144_v27  ;;  %v139_v34 = vadd.s32 8, %v138_v26 }
  0x10   :  { %vm149_vm3 = vmpackc.low %vm147_vm2, %vm147_vm2 }
  0x11   :  { %vm148_vm4 = vcmp.ne.s32.totalorder %v139_v34, %v144_v27 }
  0x12   :  { %vm150_vm5 = vmpackc.low %vm148_vm4, %vm148_vm4 }
  0x13   :  { %77 = vmatmul.bf16.vlgmr.msra.gmra.mxu0 %v217_v1  ;;  %v85_v11 = vld [vmem:[#allocation2] sm:$0xff] }
  0x14   :  { %v86_v15 = vld [vmem:[#allocation2 + $0x8] sm:$0xff] }
  0x15   :  { %v155_v46 = vld [vmem:[#allocation3] sm:$0xff] }
  0x16   :  { %v156_v51 = vld [vmem:[#allocation3 + $0x8] sm:$0xff] }
  0x90   :  { %v78_v3 = vpop.f32.mrf.mxu0 }
  0x91   :  { %v83_v4 = vmul.f32 14.285714, %v78_v3 }
  0x93   :  { %v88_v5 = vsel %vm87_vm1, %v83_v4, -inf }
  0x94   :  { %89 = vmax.xlane.f32.xlu0 %v88_v5 }
  0x98   :  { %v80_v6 = vpop.f32.mrf.mxu0 }
  0x99   :  { %v84_v7 = vmul.f32 14.285714, %v80_v6 }
  0x9b   :  { %v91_v8 = vsel %vm87_vm1, %v84_v7, -inf }
  0x9c   :  { %92 = vmax.xlane.f32.xlu0 %v91_v8 }
 0x107   :  { %v90_v12 = vpop.xlane.xlu0 %89 }
 0x108   :  { %v94_v13 = vmax.f32 %v85_v11, %v90_v12 }
 0x10a   :  { %v96_v14 = vsub.f32 %v85_v11, %v94_v13  ;;  %125 = vst.msk [vmem:[#allocation2] sm:$0xff] %vm48_vm0, %v94_v13  ;;  %104 = vperm.xlu1 %226, %v94_v13  }
 0x10c   :  { %v98_v43 = vmul.f32 1.442695, %v96_v14 }
 0x10f   :  { %v93_v16 = vpop.xlane.xlu0 %92 }
 0x110   :  { %v95_v17 = vmax.f32 %v86_v15, %v93_v16 }
 0x111   :  { %v191_v59 = vld [vmem:[#allocation2] sm:$0xff] }
 0x112   :  { %v97_v18 = vsub.f32 %v86_v15, %v95_v17  ;;  %126 = vst.msk [vmem:[#allocation2 + $0x8] sm:$0xff] %vm48_vm0, %v95_v17  ;;  %109 = vperm.xlu1 %226, %v95_v17  }
 0x114   :  { %v100_v44 = vmul.f32 1.442695, %v97_v18 }
 0x119   :  { %v192_v63 = vld [vmem:[#allocation2 + $0x8] sm:$0xff] }
 0x17c   :  { %v105_v19 = vpop.permute.xlu1 %104 }
 0x17d   :  { %v112_v20 = vsub.f32 %v83_v4, %v105_v19 }
 0x17f   :  { %v114_v21 = vpack.c.bf16 %v112_v20, %v112_v20 }
 0x181   :  { %v116_v23 = vunpack.c.l.bf16 %v114_v21 }
 0x183   :  { %v118_v24 = vmul.f32 1.442695, %v116_v23 }
 0x184   :  { %v110_v25 = vpop.permute.xlu1 %109 }
 0x185   :  { %228 = vpow2.f32 %v118_v24  ;;  %v113_v28 = vsub.f32 %v84_v7, %v110_v25 }
 0x187   :  { %v115_v29 = vpack.c.bf16 %v113_v28, %v113_v28 }
 0x189   :  { %v117_v30 = vunpack.c.l.bf16 %v115_v29 }
 0x18b   :  { %v229_v31 = vpop.eup %228  ;;  %v120_v32 = vmul.f32 1.442695, %v117_v30 }
 0x18c   :  { %v122_v33 = vpack.c.bf16 %v229_v31, %v229_v31 }
 0x18d   :  { %230 = vpow2.f32 %v120_v32 }
 0x18e   :  { %v151_v35 = vsel %vm149_vm3, %v122_v33, 0  ;;  %232 = vpow2.f32 %v98_v43 }
 0x18f   :  { %v153_v36 = vunpack.c.l.bf16 %v151_v35  ;;  %234 = vpow2.f32 %v100_v44 }
 0x191   :  { %v159_v37 = vsel %vm87_vm1, %v153_v36, 0.0 }
 0x192   :  { %160 = vadd.xlane.f32.xlu2 %v159_v37 }
 0x193   :  { %v231_v38 = vpop.eup %230 }
 0x194   :  { %v123_v39 = vpack.c.bf16 %v231_v38, %v231_v38  ;;  %v233_v45 = vpop.eup %232 }
 0x195   :  { %v157_v47 = vmul.f32 %v233_v45, %v155_v46  ;;  %v235_v50 = vpop.eup %234 }
 0x196   :  { %v152_v40 = vsel %vm150_vm5, %v123_v39, 0  ;;  %v158_v52 = vmul.f32 %v235_v50, %v156_v51 }
 0x197   :  { %v154_v41 = vunpack.c.l.bf16 %v152_v40 }
 0x199   :  { %v162_v42 = vsel %vm87_vm1, %v154_v41, 0.0 }
 0x19a   :  { %163 = vadd.xlane.f32.xlu2 %v162_v42 }
 0x205   :  { %v161_v48 = vpop.xlane.xlu2 %160 }
 0x206   :  { %v165_v49 = vadd.f32 %v161_v48, %v157_v47 }
 0x208   :  { %167 = vst.msk [vmem:[#allocation3] sm:$0xff] %vm48_vm0, %v165_v49 }
 0x20d   :  { %v164_v53 = vpop.xlane.xlu2 %163 }
 0x20e   :  { %v166_v54 = vadd.f32 %v164_v53, %v158_v52 }
 0x20f   :  { %v193_v55 = vld [vmem:[#allocation3] sm:$0xff] }
 0x210   :  { %236 = vlog2.f32 %v193_v55  ;;  %168 = vst.msk [vmem:[#allocation3 + $0x8] sm:$0xff] %vm48_vm0, %v166_v54 }
 0x216   :  { %v237_v56 = vpop.eup %236 }
 0x217   :  { %v196_v57 = vmul.f32 0.6931472, %v237_v56  ;;  %v194_v58 = vld [vmem:[#allocation3 + $0x8] sm:$0xff] }
 0x218   :  { %238 = vlog2.f32 %v194_v58 }
 0x219   :  { %v199_v60 = vadd.f32 %v196_v57, %v191_v59 }
 0x21b   :  { %201 = vst.msk [vmem:[%s342_s2] sm:$0xff] %vm48_vm0, %v199_v60 }
 0x21e   :  { %v239_v61 = vpop.eup %238 }
 0x21f   :  { %v198_v62 = vmul.f32 0.6931472, %v239_v61 }
 0x221   :  { %v200_v0 = vadd.f32 %v198_v62, %v192_v63 }
 0x223   :  { %202 = vst.msk [vmem:[%s342_s2 + $0x8] sm:$0xff] %vm48_vm0, %v200_v0 }
 0x224   :  { %207 = vsyncpa [#allocation5], 1 }
 0x225   :  { %208 = vsyncpa [#allocation7], 1 }

</bundles_post_ra>
